<compile_context>
chip_gen: v7x
topology: tpu7x:2x2x1
jax: 0.10.0
libtpu: 0.0.40
codegen_flags: <defaults>
</compile_context>

<pallas_src>
import functools

import jax
import jax.numpy as jnp
from jax.experimental import pallas as pl
from jax.experimental.pallas import tpu as pltpu

# mnist config from GENERATORCONFIGS
HIDDEN_DIM = 256
LATENT_DIM = 32
N_CLASS = 10
NOISE_DIM = 32
INPUT_DIM = NOISE_DIM + N_CLASS          # embedding=False -> noise_dim + n_class (= 42)
BN_EPS = 1e-5

LANE = 128
IN_PAD = LANE                            # K of the fc matmul, padded 42 -> 128 (lane aligned)

FUSED_MAX_BATCH = 2048                   # whole-batch-in-VMEM path up to here
TILE_B_DEFAULT = 2048                    # batch tile of the tiled path (multiple of 8)
VMEM_LIMIT = 48 * 1024 * 1024            # explicit scoped-VMEM budget (fits v7x's 64 MiB)


def _build_fc_input(labels, u):
    """(B,128) MXU input block: lanes 0..31 = eps, lanes 32..41 = one_hot(labels), rest 0.

    `labels` is (B,1) int32, `u` is (B,128) f32 uniform noise (only lanes 0..31 are used —
    the where discards lanes >= 32 of u, so nothing relies on them being zero).  Padded rows
    (labels == -1 and u == 0) produce an exactly-zero input row, so they contribute nothing
    to the BatchNorm statistics.
    """
    b = u.shape[0]
    col = jax.lax.broadcasted_iota(jnp.int32, (b, IN_PAD), 1)
    onehot = (col == labels + NOISE_DIM).astype(jnp.float32)
    return jnp.where(col < NOISE_DIM, u, onehot)


# --------------------------------------------------------------------------------------
# Path 1: single fused kernel (whole batch in VMEM).  fc -> BN(train) -> ReLU -> Linear.
# --------------------------------------------------------------------------------------
def _generator_fused_kernel(labels_ref, u_ref, w1_ref, gamma_ref, beta_ref,
                            w2_ref, b2_ref, out_ref):
    x = _build_fc_input(labels_ref[...], u_ref[...])                     # (B, 128) f32

    # fc: Linear(42, 256) as one K=128 lane-aligned MXU pass (class one-hot folded in).
    # The fc bias b1 is intentionally omitted — train-mode BatchNorm subtracts the batch
    # mean right after, so a per-feature constant bias cancels exactly.
    h = jnp.dot(x.astype(w1_ref.dtype), w1_ref[...],
                preferred_element_type=jnp.float32)                      # (B, 256) f32

    # BatchNorm1d (training mode, biased batch stats), affine folded into scale/shift.
    mean = jnp.mean(h, axis=0, keepdims=True)
    var = jnp.maximum(jnp.mean(h * h, axis=0, keepdims=True) - mean * mean, 0.0)
    scale = gamma_ref[...] * jax.lax.rsqrt(var + BN_EPS)
    shift = beta_ref[...] - mean * scale
    h = jnp.maximum(h * scale + shift, 0.0)                              # BN + ReLU (f32 VPU)

    # representation_layer: Linear(256, 32); output written at exact width (no lane pad).
    out = jnp.dot(h.astype(w2_ref.dtype), w2_ref[...],
                  preferred_element_type=jnp.float32) + b2_ref[...]
    out_ref[...] = out.astype(out_ref.dtype)


def _forward_fused(labels2d, u, params):
    batch = u.shape[0]
    vmem = pl.BlockSpec(memory_space=pltpu.MemorySpace.VMEM)
    return pl.pallas_call(
        _generator_fused_kernel,
        out_shape=jax.ShapeDtypeStruct((batch, LATENT_DIM), jnp.float32),
        in_specs=[vmem] * 7,
        out_specs=vmem,
        compiler_params=pltpu.CompilerParams(vmem_limit_bytes=VMEM_LIMIT),
    )(labels2d, u, params["w1"], params["gamma"], params["beta"],
      params["w2"], params["b2"])


# --------------------------------------------------------------------------------------
# Path 2: batch-tiled two-pass path for large batches (BN needs full-batch statistics).
#   kernel A: per batch tile, h = x @ W1 (bf16 stored) + per-tile (sum, sumsq) partials.
#   wrapper : fold partials -> BN scale/shift (tiny (1,256) math).
#   kernel B: per batch tile, BN affine + ReLU + Linear(256,32).
# Both grids are "parallel" over the batch axis (megacore split on v7x).
# --------------------------------------------------------------------------------------
def _fc_stats_kernel(labels_ref, u_ref, w1_ref, h_ref, part_ref):
    x = _build_fc_input(labels_ref[...], u_ref[...])
    h = jnp.dot(x.astype(w1_ref.dtype), w1_ref[...],
                preferred_element_type=jnp.float32)                      # (tile, 256) f32
    h_ref[...] = h.astype(h_ref.dtype)                                   # bf16 intermediate
    part_ref[0:1, :] = jnp.sum(h, axis=0, keepdims=True)                 # per-tile sum
    part_ref[1:2, :] = jnp.sum(h * h, axis=0, keepdims=True)             # per-tile sumsq


def _bn_relu_fc_kernel(h_ref, scale_ref, shift_ref, w2_ref, b2_ref, out_ref):
    h = h_ref[...].astype(jnp.float32)                                   # f32 VPU math (v5e)
    h = jnp.maximum(h * scale_ref[...] + shift_ref[...], 0.0)
    out = jnp.dot(h.astype(w2_ref.dtype), w2_ref[...],
                  preferred_element_type=jnp.float32) + b2_ref[...]
    out_ref[...] = out.astype(out_ref.dtype)


def _forward_tiled(labels2d, u, params, tile_b):
    batch = u.shape[0]
    n_tiles = pl.cdiv(batch, tile_b)
    batch_pad = n_tiles * tile_b
    if batch_pad != batch:
        # Padded rows: u = 0 and label = -1 -> kernel input row is exactly zero, so the
        # padded rows contribute nothing to sum/sumsq (stats divide by the true batch).
        u = jnp.pad(u, ((0, batch_pad - batch), (0, 0)))
        labels2d = jnp.pad(labels2d, ((0, batch_pad - batch), (0, 0)), constant_values=-1)

    h, parts = pl.pallas_call(
        _fc_stats_kernel,
        grid=(n_tiles,),
        in_specs=[
            pl.BlockSpec((tile_b, 1), lambda i: (i, 0)),
            pl.BlockSpec((tile_b, IN_PAD), lambda i: (i, 0)),
            pl.BlockSpec((IN_PAD, HIDDEN_DIM), lambda i: (0, 0)),
        ],
        out_specs=(
            pl.BlockSpec((tile_b, HIDDEN_DIM), lambda i: (i, 0)),
            pl.BlockSpec((None, 2, HIDDEN_DIM), lambda i: (i, 0, 0)),
        ),
        out_shape=(
            jax.ShapeDtypeStruct((batch_pad, HIDDEN_DIM), jnp.bfloat16),
            jax.ShapeDtypeStruct((n_tiles, 2, HIDDEN_DIM), jnp.float32),
        ),
        compiler_params=pltpu.CompilerParams(
            dimension_semantics=("parallel",), vmem_limit_bytes=VMEM_LIMIT),
    )(labels2d, u, params["w1"])

    # Fold per-tile partials into the BN scale/shift (tiny (1,256) math, fuses under jit).
    stats = jnp.sum(parts, axis=0)                                       # (2, 256)
    mean = stats[0:1, :] / batch
    var = jnp.maximum(stats[1:2, :] / batch - mean * mean, 0.0)
    scale = params["gamma"] * jax.lax.rsqrt(var + BN_EPS)
    shift = params["beta"] - mean * scale

    out = pl.pallas_call(
        _bn_relu_fc_kernel,
        grid=(n_tiles,),
        in_specs=[
            pl.BlockSpec((tile_b, HIDDEN_DIM), lambda i: (i, 0)),
            pl.BlockSpec((1, HIDDEN_DIM), lambda i: (0, 0)),
            pl.BlockSpec((1, HIDDEN_DIM), lambda i: (0, 0)),
            pl.BlockSpec((HIDDEN_DIM, LATENT_DIM), lambda i: (0, 0)),
            pl.BlockSpec((1, LATENT_DIM), lambda i: (0, 0)),
        ],
        out_specs=pl.BlockSpec((tile_b, LATENT_DIM), lambda i: (i, 0)),
        out_shape=jax.ShapeDtypeStruct((batch_pad, LATENT_DIM), jnp.float32),
        compiler_params=pltpu.CompilerParams(
            dimension_semantics=("parallel",), vmem_limit_bytes=VMEM_LIMIT),
    )(h, scale, shift, params["w2"], params["b2"])

    return out[:batch] if batch_pad != batch else out


# --------------------------------------------------------------------------------------
# Public wrapper — mirrors Generator.forward(labels, latent_layer_idx=-1, verbose=True).
# --------------------------------------------------------------------------------------
@functools.partial(jax.jit, static_argnames=("force_tiled", "tile_b"))
def generator_forward(labels, params, key, force_tiled=False, tile_b=TILE_B_DEFAULT):
    """Returns {'eps': (B, 32) U[0,1) noise, 'output': (B, 32) latent representation}."""
    batch = labels.shape[0]
    labels2d = labels.reshape(batch, 1).astype(jnp.int32)
    # eps ~ U[0,1): generated with jax.random (portable + interpret-safe); a full 128-lane
    # block is drawn so the kernel input stays lane dense; lanes 0..31 are the returned eps.
    u = jax.random.uniform(key, (batch, IN_PAD), jnp.float32)
    eps = u[:, :NOISE_DIM]

    if force_tiled or batch > FUSED_MAX_BATCH:
        out = _forward_tiled(labels2d, u, params, tile_b)
    else:
        out = _forward_fused(labels2d, u, params)
    return {"eps": eps, "output": out}


def init_params(key):
    """PyTorch-equivalent init (nn.Linear: U(-1/sqrt(fan_in), 1/sqrt(fan_in)); BN: w=1, b=0),
    stored in the kernel layout:
      w1 : (128, 256) bf16 — rows 0..31 = fc.weight[:, :32].T (noise part),
                              rows 32..41 = fc.weight[:, 32:].T (class rows), rest zero.
      w2 : (256,  32) bf16 — representation_layer.weight.T
    """
    k1, k2, k3, k4 = jax.random.split(key, 4)
    bound1 = 1.0 / jnp.sqrt(float(INPUT_DIM))
    bound2 = 1.0 / jnp.sqrt(float(HIDDEN_DIM))

    w1_full = jax.random.uniform(k1, (INPUT_DIM, HIDDEN_DIM), jnp.float32, -bound1, bound1)
    w1 = jnp.zeros((IN_PAD, HIDDEN_DIM), jnp.float32).at[:INPUT_DIM].set(w1_full)
    w2 = jax.random.uniform(k3, (HIDDEN_DIM, LATENT_DIM), jnp.float32, -bound2, bound2)
    b2 = jax.random.uniform(k4, (1, LATENT_DIM), jnp.float32, -bound2, bound2)

    return {
        "w1": w1.astype(jnp.bfloat16),
        # fc bias: kept for PyTorch parameter parity but unused in the kernels — it is
        # mathematically cancelled by the train-mode BatchNorm mean subtraction.
        "b1": jax.random.uniform(k2, (1, HIDDEN_DIM), jnp.float32, -bound1, bound1),
        "gamma": jnp.ones((1, HIDDEN_DIM), jnp.float32),
        "beta": jnp.zeros((1, HIDDEN_DIM), jnp.float32),
        "w2": w2.astype(jnp.bfloat16),
        "b2": b2,
    }


def _reference_forward(labels, params, eps):
    """Pure-JAX reference mirroring the PyTorch forward (f32, incl. the fc bias b1)."""
    w1 = params["w1"].astype(jnp.float32)[:INPUT_DIM]                    # (42, 256)
    y = jax.nn.one_hot(labels, N_CLASS, dtype=jnp.float32)
    z = jnp.concatenate([eps, y], axis=1)                                # torch.cat((eps, y), 1)
    h = z @ w1 + params["b1"]                                            # nn.Linear(42, 256)
    mean = jnp.mean(h, axis=0, keepdims=True)                            # BN train: batch stats
    var = jnp.mean((h - mean) ** 2, axis=0, keepdims=True)
    h = (h - mean) * jax.lax.rsqrt(var + BN_EPS) * params["gamma"] + params["beta"]
    h = jnp.maximum(h, 0.0)                                              # ReLU
    w2 = params["w2"].astype(jnp.float32)
    return h @ w2 + params["b2"]                                         # nn.Linear(256, 32)


def _check(result, labels, params, batch):
    assert result["output"].shape == (batch, LATENT_DIM)
    assert result["eps"].shape == (batch, NOISE_DIM)
    assert bool(jnp.all(jnp.isfinite(result["output"])))
    assert bool(jnp.all((result["eps"] >= 0.0) & (result["eps"] < 1.0)))
    ref = _reference_forward(labels, params, result["eps"])
    err = float(jnp.max(jnp.abs(result["output"] - ref)))
    assert bool(jnp.allclose(result["output"], ref, rtol=3e-2, atol=3e-2)), err


if __name__ == "__main__":
    root = jax.random.PRNGKey(0)
    k_params, k_lab1, k_noise1, k_lab2, k_noise2 = jax.random.split(root, 5)
    params = init_params(k_params)

    # Path 1: fused whole-batch kernel (small batch).
    b1 = 8
    labels1 = jax.random.randint(k_lab1, (b1,), 0, N_CLASS, dtype=jnp.int32)
    res1 = generator_forward(labels1, params, k_noise1)
    jax.block_until_ready(res1["output"])
    _check(res1, labels1, params, b1)

    # Path 2: batch-tiled two-pass path, forced with a small tile (batch not a tile multiple
    # to exercise the padded-row / exact-batch-statistics handling).
    b2 = 12
    labels2 = jax.random.randint(k_lab2, (b2,), 0, N_CLASS, dtype=jnp.int32)
    res2 = generator_forward(labels2, params, k_noise2, force_tiled=True, tile_b=8)
    jax.block_until_ready(res2["output"])
    _check(res2, labels2, params, b2)

    print("KERNEL_OK")
</pallas_src>

<mosaic_0001>
module attributes {stable_mosaic.version = 11 : i64} {
  func.func @_generator_fused_kernel(%arg0: memref<8x1xi32, #tpu.memory_space<vmem>>, %arg1: memref<8x128xf32, #tpu.memory_space<vmem>>, %arg2: memref<128x256xbf16, #tpu.memory_space<vmem>>, %arg3: memref<1x256xf32, #tpu.memory_space<vmem>>, %arg4: memref<1x256xf32, #tpu.memory_space<vmem>>, %arg5: memref<256x32xbf16, #tpu.memory_space<vmem>>, %arg6: memref<1x32xf32, #tpu.memory_space<vmem>>, %arg7: memref<8x32xf32, #tpu.memory_space<vmem>>) attributes {dimension_semantics = [], scalar_prefetch = 0 : i64, scratch_operands = 0 : i64, tpu.core_type = #tpu.core_type<tc>} {
    %c0 = arith.constant 0 : index
    %c0_0 = arith.constant 0 : index
    %0 = vector.load %arg0[%c0, %c0_0] : memref<8x1xi32, #tpu.memory_space<vmem>>, vector<8x1xi32>
    %c0_1 = arith.constant 0 : index
    %c0_2 = arith.constant 0 : index
    %1 = vector.load %arg1[%c0_1, %c0_2] : memref<8x128xf32, #tpu.memory_space<vmem>>, vector<8x128xf32>
    %2 = tpu.iota {dimensions = array<i32: 1>} : vector<8x128xi32>
    %c32_i32 = arith.constant 32 : i32
    %3 = vector.broadcast %c32_i32 : i32 to vector<8x1xi32>
    %4 = arith.addi %0, %3 : vector<8x1xi32>
    %5 = vector.broadcast %4 : vector<8x1xi32> to vector<8x128xi32>
    %6 = arith.cmpi eq, %2, %5 : vector<8x128xi32>
    %7 = arith.extui %6 : vector<8x128xi1> to vector<8x128xi32>
    %8 = arith.sitofp %7 : vector<8x128xi32> to vector<8x128xf32>
    %c32_i32_3 = arith.constant 32 : i32
    %9 = vector.broadcast %c32_i32_3 : i32 to vector<8x128xi32>
    %10 = arith.cmpi slt, %2, %9 : vector<8x128xi32>
    %11 = arith.select %10, %1, %8 : vector<8x128xi1>, vector<8x128xf32>
    %12 = arith.truncf %11 : vector<8x128xf32> to vector<8x128xbf16>
    %c0_4 = arith.constant 0 : index
    %c0_5 = arith.constant 0 : index
    %13 = vector.load %arg2[%c0_4, %c0_5] : memref<128x256xbf16, #tpu.memory_space<vmem>>, vector<128x256xbf16>
    %cst = arith.constant dense<0.000000e+00> : vector<8x256xf32>
    %14 = tpu.matmul %12, %13, %cst {dimension_numbers = #tpu.dot_dimension_numbers<[1], [0], [0], [1], [0, 0, 1, 1], [], []>} : vector<8x128xbf16>, vector<128x256xbf16>, vector<8x256xf32> -> vector<8x256xf32>
    %cst_6 = arith.constant dense<0.000000e+00> : vector<256xf32>
    %15 = vector.multi_reduction <add>, %14, %cst_6 [0] : vector<8x256xf32> to vector<256xf32>
    %16 = vector.shape_cast %15 : vector<256xf32> to vector<1x256xf32>
    %cst_7 = arith.constant 8.000000e+00 : f32
    %17 = vector.broadcast %cst_7 : f32 to vector<1x256xf32>
    %18 = arith.divf %16, %17 : vector<1x256xf32>
    %19 = arith.mulf %14, %14 : vector<8x256xf32>
    %cst_8 = arith.constant dense<0.000000e+00> : vector<256xf32>
    %20 = vector.multi_reduction <add>, %19, %cst_8 [0] : vector<8x256xf32> to vector<256xf32>
    %21 = vector.shape_cast %20 : vector<256xf32> to vector<1x256xf32>
    %cst_9 = arith.constant 8.000000e+00 : f32
    %22 = vector.broadcast %cst_9 : f32 to vector<1x256xf32>
    %23 = arith.divf %21, %22 : vector<1x256xf32>
    %24 = arith.mulf %18, %18 : vector<1x256xf32>
    %25 = arith.subf %23, %24 : vector<1x256xf32>
    %cst_10 = arith.constant 0.000000e+00 : f32
    %26 = vector.broadcast %cst_10 : f32 to vector<1x256xf32>
    %27 = arith.maximumf %25, %26 : vector<1x256xf32>
    %c0_11 = arith.constant 0 : index
    %c0_12 = arith.constant 0 : index
    %28 = vector.load %arg3[%c0_11, %c0_12] : memref<1x256xf32, #tpu.memory_space<vmem>>, vector<1x256xf32>
    %cst_13 = arith.constant 9.99999974E-6 : f32
    %29 = vector.broadcast %cst_13 : f32 to vector<1x256xf32>
    %30 = arith.addf %27, %29 : vector<1x256xf32>
    %31 = math.rsqrt %30 : vector<1x256xf32>
    %32 = arith.mulf %28, %31 : vector<1x256xf32>
    %c0_14 = arith.constant 0 : index
    %c0_15 = arith.constant 0 : index
    %33 = vector.load %arg4[%c0_14, %c0_15] : memref<1x256xf32, #tpu.memory_space<vmem>>, vector<1x256xf32>
    %34 = arith.mulf %18, %32 : vector<1x256xf32>
    %35 = arith.subf %33, %34 : vector<1x256xf32>
    %36 = vector.broadcast %32 : vector<1x256xf32> to vector<8x256xf32>
    %37 = arith.mulf %14, %36 : vector<8x256xf32>
    %38 = vector.broadcast %35 : vector<1x256xf32> to vector<8x256xf32>
    %39 = arith.addf %37, %38 : vector<8x256xf32>
    %cst_16 = arith.constant 0.000000e+00 : f32
    %40 = vector.broadcast %cst_16 : f32 to vector<8x256xf32>
    %41 = arith.maximumf %39, %40 : vector<8x256xf32>
    %42 = arith.truncf %41 : vector<8x256xf32> to vector<8x256xbf16>
    %c0_17 = arith.constant 0 : index
    %c0_18 = arith.constant 0 : index
    %43 = vector.load %arg5[%c0_17, %c0_18] : memref<256x32xbf16, #tpu.memory_space<vmem>>, vector<256x32xbf16>
    %cst_19 = arith.constant dense<0.000000e+00> : vector<8x32xf32>
    %44 = tpu.matmul %42, %43, %cst_19 {dimension_numbers = #tpu.dot_dimension_numbers<[1], [0], [0], [1], [0, 0, 1, 1], [], []>} : vector<8x256xbf16>, vector<256x32xbf16>, vector<8x32xf32> -> vector<8x32xf32>
    %c0_20 = arith.constant 0 : index
    %c0_21 = arith.constant 0 : index
    %45 = vector.load %arg6[%c0_20, %c0_21] : memref<1x32xf32, #tpu.memory_space<vmem>>, vector<1x32xf32>
    %46 = vector.broadcast %45 : vector<1x32xf32> to vector<8x32xf32>
    %47 = arith.addf %44, %46 : vector<8x32xf32>
    %c0_22 = arith.constant 0 : index
    %c0_23 = arith.constant 0 : index
    %48 = vector.load %arg7[%c0_22, %c0_23] : memref<8x32xf32, #tpu.memory_space<vmem>>, vector<8x32xf32>
    tpu.vector_store %arg7[%c0_22, %c0_23], %47 {strides = array<i32>} : memref<8x32xf32, #tpu.memory_space<vmem>>, vector<8x32xf32>,
    return
  }
}

</mosaic_0001>

<bundles_post_ra>
// kernel: generator_forward.1
= control target key start
LH: loop header
LB: loop body
LE: loop exit
PB: predicated region body
PF: predicated region fallthrough
CT: control target
= control target key end

     0   :  { %v612_v1 = vmov 0   ;;  %s788_s0 = inlined_call_operand.vmem [shape: s32[8,1], index: 0, kind: input, shape index: {}]   ;;  %s789_s1 = inlined_call_operand.vmem [shape: f32[8,128], index: 1, kind: input, shape index: {}]   ;;  %s790_s2 = inlined_call_operand.vmem [shape: bf16[128,256], index: 2, kind: input, shape index: {}]   ;;  %s791_s3 = inlined_call_operand.vmem [shape: f32[1,256], index: 3, kind: input, shape index: {}]   ;;  %s792_s4 = inlined_call_operand.vmem [shape: f32[1,256], index: 4, kind: input, shape index: {}]   ;;  %s793_s5 = inlined_call_operand.vmem [shape: bf16[256,32], index: 5, kind: input, shape index: {}]   ;;  %s794_s6 = inlined_call_operand.vmem [shape: f32[1,32], index: 6, kind: input, shape index: {}]   ;;  %s795_s7 = inlined_call_operand.hbm [shape: f32[8,32], index: 7, kind: output, shape index: {}]  }
   0x1   :  { %v28_v0 = vld [vmem:[%s788_s0] sm:$0xff]  ;;  %543 = vset.pattern.permute.xlu0 %v612_v1  ;;  %170 = vmatprep.mubr.bf16.mxu0 %v612_v1  ;;  %v547_v5 = vld [vmem:[%s790_s2 + $0x14] ss:$8 sps:$4 sm:$0xff]   ;;  %v549_v6 = vld [vmem:[%s790_s2 + $0x10] ss:$8 sps:$4 sm:$0xff]  }
   0x2   :  { %v32_v2 = vadd.s32 32, %v28_v0  ;;  %v544_v3 = vld [vmem:[%s790_s2 + $0x4] ss:$8 sps:$4 sm:$0xff]   ;;  %v546_v4 = vld [vmem:[%s790_s2] ss:$8 sps:$4 sm:$0xff]  }
   0x3   :  { %138 = vmatprep.subr.bf16.mxu0 %v544_v3  ;;  %v550_v7 = vld [vmem:[%s790_s2 + $0x24] ss:$8 sps:$4 sm:$0xff]   ;;  %v552_v8 = vld [vmem:[%s790_s2 + $0x20] ss:$8 sps:$4 sm:$0xff]   ;;  %v553_v9 = vld [vmem:[%s790_s2 + $0x34] ss:$8 sps:$4 sm:$0xff]  }
   0x4   :  { %34 = vperm.xlu0 %543, %v32_v2   ;;  %139 = vmatpush1.bf16.msra.mxu0 %v546_v4  ;;  %v555_v10 = vld [vmem:[%s790_s2 + $0x30] ss:$8 sps:$4 sm:$0xff]   ;;  %v556_v11 = vld [vmem:[%s790_s2 + $0x44] ss:$8 sps:$4 sm:$0xff]   ;;  %v558_v12 = vld [vmem:[%s790_s2 + $0x40] ss:$8 sps:$4 sm:$0xff]  }
   0x5   :  { %140 = vmatprep.subr.bf16.mxu0 %v547_v5  ;;  %v559_v13 = vld [vmem:[%s790_s2 + $0x54] ss:$8 sps:$4 sm:$0xff]   ;;  %v561_v14 = vld [vmem:[%s790_s2 + $0x50] ss:$8 sps:$4 sm:$0xff]   ;;  %v562_v15 = vld [vmem:[%s790_s2 + $0x64] ss:$8 sps:$4 sm:$0xff]  }
   0x8   :  { %141 = vmatpush1.bf16.msra.mxu0 %v549_v6 }
   0x9   :  { %142 = vmatprep.subr.bf16.mxu0 %v550_v7 }
   0xc   :  { %143 = vmatpush1.bf16.msra.mxu0 %v552_v8 }
   0xd   :  { %144 = vmatprep.subr.bf16.mxu0 %v553_v9 }
  0x10   :  { %145 = vmatpush1.bf16.msra.mxu0 %v555_v10 }
  0x11   :  { %146 = vmatprep.subr.bf16.mxu0 %v556_v11 }
  0x14   :  { %147 = vmatpush1.bf16.msra.mxu0 %v558_v12 }
  0x15   :  { %148 = vmatprep.subr.bf16.mxu0 %v559_v13 }
  0x16   :  { %12 = vsyncpa [#allocation3], 0  ;;  %v564_v16 = vld [vmem:[%s790_s2 + $0x60] ss:$8 sps:$4 sm:$0xff]   ;;  %v565_v17 = vld [vmem:[%s790_s2 + $0x74] ss:$8 sps:$4 sm:$0xff]   ;;  %v30_v19 = vlaneseq }
  0x17   :  { %v567_v18 = vld [vmem:[%s790_s2 + $0x70] ss:$8 sps:$4 sm:$0xff]   ;;  %v29_v21 = vld [vmem:[%s789_s1] sm:$0xff]  ;;  %v613_v23 = vmov 0.0   ;;  %v570_v29 = vld [vmem:[%s793_s5 + $0x48] sm:$0xff]   ;;  %s615_s20 = smov [#allocation2]  }
  0x18   :  { %149 = vmatpush1.bf16.msra.mxu0 %v561_v14  ;;  %v31_v20 = vand.u32 127, %v30_v19  ;;  %v568_v27 = vld [vmem:[%s793_s5 + $0x40] sm:$0xff]   ;;  %v571_v30 = vld [vmem:[%s793_s5 + $0x8] sm:$0xff]   ;;  %v572_v31 = vld [vmem:[%s793_s5 + $0x50] sm:$0xff]   ;;  %vm467_vm2 = vcmask 261120  }
  0x19   :  { %150 = vmatprep.subr.bf16.mxu0 %v562_v15  ;;  %v569_v28 = vld [vmem:[%s793_s5] sm:$0xff]   ;;  %517 = vmatprep.subr.bf16.mxu1 %v568_v27  ;;  %v573_v32 = vld [vmem:[%s793_s5 + $0x10] sm:$0xff]   ;;  %v574_v33 = vld [vmem:[%s793_s5 + $0x58] sm:$0xff]  }
  0x1a   :  { %vm39_vm0 = vcmp.lt.s32.totalorder %v31_v20, 32  ;;  %518 = vmatpush3.bf16.msra.mxu1 %v569_v28  ;;  %v575_v34 = vld [vmem:[%s793_s5 + $0x18] sm:$0xff]   ;;  %v576_v35 = vld [vmem:[%s793_s5 + $0x60] sm:$0xff]   ;;  %v578_v37 = vld [vmem:[%s793_s5 + $0x68] sm:$0xff]  }
  0x1b   :  { %519 = vmatprep.subr.bf16.mxu1 %v570_v29  ;;  %v577_v36 = vld [vmem:[%s793_s5 + $0x20] sm:$0xff]   ;;  %v579_v38 = vld [vmem:[%s793_s5 + $0x28] sm:$0xff]   ;;  %v580_v39 = vld [vmem:[%s793_s5 + $0x70] sm:$0xff]  }
  0x1c   :  { %151 = vmatpush1.bf16.msra.mxu0 %v564_v16  ;;  %v581_v40 = vld [vmem:[%s793_s5 + $0x30] sm:$0xff]   ;;  %v582_v41 = vld [vmem:[%s793_s5 + $0x78] sm:$0xff]  }
  0x1d   :  { %152 = vmatprep.subr.bf16.mxu0 %v565_v17  ;;  %v583_v42 = vld [vmem:[%s793_s5 + $0x38] sm:$0xff]  }
  0x1e   :  { %520 = vmatpush3.bf16.msra.mxu1 %v571_v30 }
  0x1f   :  { %521 = vmatprep.subr.bf16.mxu1 %v572_v31  ;;  %v216_v31 = vld [vmem:[%s791_s3] sm:$0x3] }
  0x20   :  { %153 = vmatpush1.bf16.msra.mxu0 %v567_v18 }
  0x22   :  { %522 = vmatpush3.bf16.msra.mxu1 %v573_v32 }
  0x23   :  { %523 = vmatprep.subr.bf16.mxu1 %v574_v33 }
  0x26   :  { %524 = vmatpush3.bf16.msra.mxu1 %v575_v34 }
  0x27   :  { %525 = vmatprep.subr.bf16.mxu1 %v576_v35 }
  0x2a   :  { %526 = vmatpush3.bf16.msra.mxu1 %v577_v36 }
  0x2b   :  { %527 = vmatprep.subr.bf16.mxu1 %v578_v37 }
  0x2e   :  { %528 = vmatpush3.bf16.msra.mxu1 %v579_v38 }
  0x2f   :  { %529 = vmatprep.subr.bf16.mxu1 %v580_v39 }
  0x32   :  { %530 = vmatpush3.bf16.msra.mxu1 %v581_v40 }
  0x33   :  { %531 = vmatprep.subr.bf16.mxu1 %v582_v41 }
  0x36   :  { %532 = vmatpush3.bf16.msra.mxu1 %v583_v42 }
  0x83   :  { %v35_v22 = vpop.permute.xlu0 %34 }
  0x84   :  { %vm36_vm1 = vcmp.eq.s32.totalorder %v31_v20, %v35_v22  ;;  %v614_v22 = vmov 1966171168  }
  0x85   :  { %v483_v24 = vsel %vm36_vm1, 1.0, %v613_v23  ;;  %v225_v23 = vunpack.c.l.s4 %v614_v22 }
  0x86   :  { %v40_v25 = vsel %vm39_vm0, %v29_v21, %v483_v24 }
  0x87   :  { %v41_v26 = vpack.c.bf16 %v40_v25, %v40_v25  ;;  %v226_v24 = vunpack.c.0.s8 %v225_v23  ;;  %v228_v25 = vshrl.u32 %v30_v19, 7 }
  0x89   :  { %171 = vmatmul.mubr.bf16.vlgmr.msra.gmra.mrb[0].mxu0 %v41_v26  ;;  %v229_v27 = vsub.s32 %v226_v24, %v228_v25  ;;  %v244_v33 = vsub.s32 0, %v228_v25  ;;  %v248_v34 = vsub.s32 1, %v228_v25 }
 0x15c   :  { %v759_v43 = vpop.f32.mrb[0].mxu0 }
 0x15d   :  { %v179_v44 = vrot.slane %v759_v43, 4  ;;  %v194_v45 = vmul.f32 %v759_v43, %v759_v43  ;;  %v174_v46 = vpop.f32.mrb[1].mxu0 }
 0x15e   :  { %v185_v47 = vrot.slane %v174_v46, 4  ;;  %v195_v48 = vmul.f32 %v174_v46, %v174_v46  ;;  %v176_v49 = vpop.f32.mrb[2].mxu0 }
 0x15f   :  { %v180_v50 = vadd.f32 %v179_v44, %v759_v43  ;;  %v196_v51 = vrot.slane %v194_v45, 4  ;;  %v177_v52 = vpop.f32.mrb[3].mxu0  ;;  %v240_v44 = vld [vmem:[%s792_s4] sm:$0x3]  ;;  %s475_s4 = sshll.u32 %s615_s20, 4  ;;  %s476_s4 = int_to_ptr.vmem [resolvable:$true] %s475_s4 }
 0x160   :  { %v186_v53 = vadd.f32 %v185_v47, %v174_v46  ;;  %v202_v54 = vrot.slane %v195_v48, 4  ;;  %s588_s21 = scalar_lea.vmem %s476_s4, 128  ;;  %p593_p1 = scmp.lt.s32.totalorder %s476_s4, %s476_s4 }
 0x161   :  { %v181_v55 = vrot.slane %v180_v50, 2  ;;  %v197_v56 = vadd.f32 %v196_v51, %v194_v45  ;;  %p589_p0 = scmp.ne.s32.totalorder %s476_s4, %s588_s21  ;;  %p594_p2 = scmp.lt.s32.totalorder %s588_s21, %s588_s21 }
 0x162   :  { %v187_v57 = vrot.slane %v186_v53, 2  ;;  %v203_v58 = vadd.f32 %v202_v54, %v195_v48 }
 0x163   :  { %v182_v59 = vadd.f32 %v181_v55, %v180_v50  ;;  %v198_v60 = vrot.slane %v197_v56, 2  ;;  %p595_p3 = por %p594_p2, %p593_p1 }
 0x164   :  { %v188_v61 = vadd.f32 %v187_v57, %v186_v53  ;;  %v204_v62 = vrot.slane %v203_v58, 2 }
 0x165   :  { %v183_v63 = vrot.slane %v182_v59, 1  ;;  %v199_v0 = vadd.f32 %v198_v60, %v197_v56  ;;  %p596_p4 = pnand %p595_p3, %p589_p0 }
 0x166   :  { %v189_v1 = vrot.slane %v188_v61, 1  ;;  %v205_v2 = vadd.f32 %v204_v62, %v203_v58 }
 0x167   :  { %v184_v3 = vadd.f32 %v183_v63, %v182_v59  ;;  %v200_v4 = vrot.slane %v199_v0, 1 }
 0x168   :  { %v206_v5 = vrot.slane %v205_v2, 1  ;;  %v190_v6 = vadd.f32 %v189_v1, %v188_v61 }
 0x169   :  { %v192_v7 = vmul.f32 0.125, %v184_v3  ;;  %v201_v8 = vadd.f32 %v200_v4, %v199_v0 }
 0x16a   :  { %v207_v9 = vadd.f32 %v206_v5, %v205_v2  ;;  %v193_v10 = vmul.f32 0.125, %v190_v6 }
 0x16b   :  { %v208_v11 = vmul.f32 0.125, %v201_v8  ;;  %v210_v12 = vmul.f32 %v192_v7, %v192_v7 }
 0x16c   :  { %v209_v13 = vmul.f32 0.125, %v207_v9  ;;  %v211_v14 = vmul.f32 %v193_v10, %v193_v10 }
 0x16d   :  { %v212_v15 = vsub.f32 %v208_v11, %v210_v12 }
 0x16e   :  { %v213_v16 = vsub.f32 %v209_v13, %v211_v14 }
 0x16f   :  { %v214_v17 = vmax.f32 %v212_v15, 0.0 }
 0x170   :  { %v215_v18 = vmax.f32 %v213_v16, 0.0 }
 0x171   :  { %v217_v20 = vadd.f32 1e-05, %v214_v17 }
 0x172   :  { %v218_v21 = vadd.f32 1e-05, %v215_v18 }
 0x173   :  { %584 = vrsqrt.f32 %v217_v20 }
 0x174   :  { %586 = vrsqrt.f32 %v218_v21 }
 0x17d   :  { %v585_v26 = vpop.eup %584 }
 0x17e   :  { %v587_v28 = vpop.eup %586 }
 0x17f   :  { %v223_v29 = vcombine.low %v585_v26, %v587_v28 }
 0x181   :  { %v230_v30 = vrot.slane %v223_v29, %v229_v27 }
 0x183   :  { %v237_v32 = vrot.slane %v230_v30, %v229_v27 }
 0x185   :  { %v239_v35 = vmul.f32 %v237_v32, %v216_v31 }
 0x187   :  { %v245_v36 = vrot.slane %v239_v35, %v244_v33  ;;  %v249_v37 = vrot.slane %v239_v35, %v248_v34 }
 0x189   :  { %v252_v38 = vmul.f32 %v245_v36, %v192_v7  ;;  %v253_v39 = vmul.f32 %v249_v37, %v193_v10  ;;  %v274_v40 = vmul.f32 %v249_v37, %v174_v46  ;;  %v273_v19 = vmul.f32 %v245_v36, %v759_v43  ;;  %v500_v43 = vld [vmem:[%s794_s6] ss:$0 sm:$0xff] }
 0x18b   :  { %v256_v41 = vcombine.low %v252_v38, %v253_v39 }
 0x18d   :  { %v263_v42 = vrot.slane %v256_v41, %v229_v27 }
 0x18f   :  { %v270_v45 = vrot.slane %v263_v42, %v229_v27 }
 0x191   :  { %v272_v47 = vsub.f32 %v240_v44, %v270_v45 }
 0x193   :  { %v283_v48 = vrot.slane %v272_v47, %v248_v34  ;;  %v279_v49 = vrot.slane %v272_v47, %v244_v33 }
 0x195   :  { %v287_v50 = vadd.f32 %v283_v48, %v274_v40  ;;  %v286_v51 = vadd.f32 %v279_v49, %v273_v19 }
 0x197   :  { %v289_v52 = vmax.f32 %v287_v50, 0.0  ;;  %v288_v53 = vmax.f32 %v286_v51, 0.0 }
 0x199   :  { %v291_v54 = vpack.c.bf16 %v289_v52, %v289_v52  ;;  %v290_v55 = vpack.c.bf16 %v288_v53, %v288_v53 }
 0x19b   :  { %459 = vmatprep.mubr.bf16.mxu1 %v291_v54 }
 0x19c   :  { %460 = vmatmul.mubr.bf16.vlgmr.msra.gmra.mrb[0].mxu1 %v290_v55 }
 0x26f   :  { %v533_v46 = vpop.f32.mrb[0].mxu1 }
 0x270   :  { %v534_v56 = vpop.f32.mrb[1].mxu1 }
 0x271   :  { %v535_v57 = vadd.f32 %v534_v56, %v533_v46  ;;  %v536_v58 = vpop.f32.mrb[2].mxu1 }
 0x272   :  { %v537_v59 = vpop.f32.mrb[3].mxu1 }
 0x273   :  { %v462_v60 = vadd.f32 %v535_v57, %v500_v43 }
 0x275   :  { %468 = vst.msk [vmem:[#allocation2] sm:$0xff] %vm467_vm2, %v462_v60 }
 0x276   :  { %599 = shalt.err (!%p596_p4)
}
 0x277   :  { %s600_s6 = scalar_lea.hbm %s795_s7, 128 }
 0x278   :  { %p601_p5 = scmp.ne.s32.totalorder %s795_s7, %s600_s6  ;;  %p604_p6 = scmp.lt.u32.totalorder %s600_s6, %s795_s7 }
 0x27a   :  { %p606_p7 = pnand %p604_p6, %p601_p5 }
 0x27c   :  { %609 = shalt.err (!%p606_p7)
}
 0x27d   :  { %478 = dma.vmem_to_hbm [thread:$0]  %s476_s4, 128, %s795_s7, [#allocation3]  }
 0x27e   :  { %610 = dma.done.wait [#allocation3], 128  }
 0x27f   :  { %611 = vsyncadd [#allocation3], 4294967168 }
 0x280   :  { %482 = vsyncpa [#allocation3], 1 }

</bundles_post_ra>
